<compile_context>
chip_gen: v6e
topology: v6e:2x2x1
jax: 0.10.0
libtpu: 0.0.40
codegen_flags: <defaults>
</compile_context>

<pallas_src>
import jax
import jax.numpy as jnp
from jax.experimental import pallas as pl
from jax.experimental.pallas import tpu as pltpu

# ---- synthetic small config (module defaults scaled down) -------------------
VOCAB = 64          # vocab_size
HIDDEN = 32         # hidden_size
MAX_POS = 16        # max_position_embeddings
MAX_2D = 32         # max_2d_position_embeddings
TYPE_VOCAB = 2      # type_vocab_size
EPS = 1e-6          # layer_norm_eps

B, S = 2, 8         # batch, sequence

H_PAD = 128         # hidden padded to one full lane group (lane-dense stores)

# ---- concatenated-table layout ----------------------------------------------
OFF_WORD = 0
OFF_POS = OFF_WORD + VOCAB          # 64
OFF_TYPE = OFF_POS + MAX_POS        # 80
OFF_X = OFF_TYPE + TYPE_VOCAB       # 82
OFF_Y = OFF_X + MAX_2D              # 114
OFF_H = OFF_Y + MAX_2D              # 146
OFF_W = OFF_H + MAX_2D              # 178
K_REAL = OFF_W + MAX_2D             # 210
K_TOTAL = 256                       # pad to multiple of 128 (lane-dense K)


def layoutlm_embed_kernel(tok_ref, table_ref, ln_ref, out_ref):
    """tok_ref:   (TN, 8) int32 [word_id, type_id, x0, y0, x1, y1, pos_id, 0]
       table_ref: (K_TOTAL, H_PAD) f32 concatenated, zero-padded tables
       ln_ref:    (2, H_PAD) f32 [gamma; beta], zero-padded past HIDDEN
       out_ref:   (TN, H_PAD) f32 (lanes >= HIDDEN are exactly zero)."""
    tn = out_ref.shape[0]
    tok = tok_ref[...]

    word_id = tok[:, 0:1]
    type_id = tok[:, 1:2]
    x0 = tok[:, 2:3]
    y0 = tok[:, 3:4]
    x1 = tok[:, 4:5]
    y1 = tok[:, 5:6]
    pos_id = tok[:, 6:7]            # precomputed in the wrapper (no iota/mod here)

    # Multi-hot selector over the concatenated-vocab axis, accumulated in int32
    # with a single float cast at the end.  Coincident ids (e.g. x0 == x1)
    # contribute 2, exactly matching x[x0] + x[x1].
    k_iota = jax.lax.broadcasted_iota(jnp.int32, (tn, K_TOTAL), 1)

    def oh(idx, off):
        return (k_iota == idx + off).astype(jnp.int32)

    multi_hot = (oh(word_id, OFF_WORD)
                 + oh(pos_id, OFF_POS)
                 + oh(type_id, OFF_TYPE)
                 + oh(x0, OFF_X) + oh(x1, OFF_X)
                 + oh(y0, OFF_Y) + oh(y1, OFF_Y)
                 + oh(y1 - y0, OFF_H)
                 + oh(x1 - x0, OFF_W)).astype(jnp.float32)

    # Single MXU pass: gathers all 9 embedding rows AND sums them.
    emb = jnp.dot(multi_hot, table_ref[...], preferred_element_type=jnp.float32)

    # LayerNorm over the real hidden lanes.  Padded lanes of `emb` are exactly
    # zero (table hidden padding is zero), so sum(...)/HIDDEN equals the true
    # mean / second moment over the 32 real lanes.
    inv_h = 1.0 / HIDDEN
    mean = jnp.sum(emb, axis=-1, keepdims=True) * inv_h
    mean_sq = jnp.sum(emb * emb, axis=-1, keepdims=True) * inv_h
    var = mean_sq - mean * mean
    normed = (emb - mean) * jax.lax.rsqrt(var + EPS)

    gamma = ln_ref[0:1, :]          # zero beyond HIDDEN -> padded out lanes are 0
    beta = ln_ref[1:2, :]
    # TODO(synk): dropout (p=0.1) omitted -> inference/identity behavior.
    out_ref[...] = (normed * gamma + beta).astype(out_ref.dtype)


def _build_combined_table(params):
    tab = jnp.concatenate(
        [params["word"], params["pos"], params["type"],
         params["x"], params["y"], params["h"], params["w"]], axis=0)
    return jnp.pad(tab, ((0, K_TOTAL - K_REAL), (0, H_PAD - HIDDEN)))


def layoutlm_embeddings(input_ids, bbox, params, token_type_ids=None):
    """input_ids: (B, S) int32, bbox: (B, S, 4) int32 -> (B, S, HIDDEN) f32."""
    b, s = input_ids.shape
    n = b * s
    if token_type_ids is None:
        token_type_ids = jnp.zeros_like(input_ids)

    # position_ids = arange(S) broadcast over batch, computed here (not in-kernel).
    pos_ids = jnp.broadcast_to(
        jnp.arange(s, dtype=jnp.int32), (b, s)).reshape(n, 1)

    # Pack all integer per-token inputs into one (N, 8) array:
    # [word_id, type_id, x0, y0, x1, y1, pos_id, 0]
    packed = jnp.concatenate(
        [input_ids.reshape(n, 1).astype(jnp.int32),
         token_type_ids.reshape(n, 1).astype(jnp.int32),
         bbox.reshape(n, 4).astype(jnp.int32),
         pos_ids,
         jnp.zeros((n, 1), jnp.int32)], axis=1)

    # Row tile: aim for >= 2 grid steps (v7x megacore), cap at 1024 rows/step,
    # keep rows a multiple of 8.  Tail rows handled by zero padding.
    rows_per_step = ((pl.cdiv(n, 2) + 7) // 8) * 8
    tn = max(8, min(1024, rows_per_step))
    n_pad = pl.cdiv(n, tn) * tn
    if n_pad > n:
        packed = jnp.pad(packed, ((0, n_pad - n), (0, 0)))

    table = _build_combined_table(params)                     # (K_TOTAL, H_PAD)
    ln_params = jnp.pad(
        jnp.concatenate([params["gamma"], params["beta"]], axis=0),
        ((0, 0), (0, H_PAD - HIDDEN)))                        # (2, H_PAD)

    tok_map = lambda i: (i, 0)
    full_map = lambda i: (0, 0)

    out = pl.pallas_call(
        layoutlm_embed_kernel,
        out_shape=jax.ShapeDtypeStruct((n_pad, H_PAD), jnp.float32),
        grid=(n_pad // tn,),
        in_specs=[
            # Tiny 8-lane packed-int input: intentionally NOT padded to 128 lanes.
            pl.BlockSpec((tn, 8), tok_map),
            # Constant-index inputs -> single-buffered.
            pl.BlockSpec((K_TOTAL, H_PAD), full_map,
                         pipeline_mode=pl.Buffered(1)),
            pl.BlockSpec((2, H_PAD), full_map,
                         pipeline_mode=pl.Buffered(1)),
        ],
        out_specs=pl.BlockSpec((tn, H_PAD), tok_map),
        compiler_params=pltpu.CompilerParams(
            dimension_semantics=("parallel",)),
    )(packed, table, ln_params)
    return out[:n, :HIDDEN].reshape(b, s, HIDDEN)


def init_params(key):
    ks = jax.random.split(key, 7)
    scale = 0.02
    word = scale * jax.random.normal(ks[0], (VOCAB, HIDDEN), jnp.float32)
    word = word.at[0].set(0.0)  # padding_idx=0
    return {
        "word": word,
        "pos": scale * jax.random.normal(ks[1], (MAX_POS, HIDDEN), jnp.float32),
        "type": scale * jax.random.normal(ks[2], (TYPE_VOCAB, HIDDEN), jnp.float32),
        "x": scale * jax.random.normal(ks[3], (MAX_2D, HIDDEN), jnp.float32),
        "y": scale * jax.random.normal(ks[4], (MAX_2D, HIDDEN), jnp.float32),
        "h": scale * jax.random.normal(ks[5], (MAX_2D, HIDDEN), jnp.float32),
        "w": scale * jax.random.normal(ks[6], (MAX_2D, HIDDEN), jnp.float32),
        "gamma": jnp.ones((1, HIDDEN), jnp.float32),
        "beta": jnp.zeros((1, HIDDEN), jnp.float32),
    }


def reference(input_ids, bbox, params):
    """Pure-JAX reference matching the PyTorch forward (eval mode)."""
    words = params["word"][input_ids]
    pos_ids = jnp.broadcast_to(jnp.arange(input_ids.shape[1]), input_ids.shape)
    pos = params["pos"][pos_ids]
    pos2d = (params["x"][bbox[:, :, 0]] + params["y"][bbox[:, :, 1]]
             + params["x"][bbox[:, :, 2]] + params["y"][bbox[:, :, 3]]
             + params["h"][bbox[:, :, 3] - bbox[:, :, 1]]
             + params["w"][bbox[:, :, 2] - bbox[:, :, 0]])
    types = params["type"][jnp.zeros_like(input_ids)]
    emb = words + (pos + pos2d) + types
    mean = emb.mean(-1, keepdims=True)
    var = ((emb - mean) ** 2).mean(-1, keepdims=True)
    return (emb - mean) / jnp.sqrt(var + EPS) * params["gamma"][0] + params["beta"][0]


if __name__ == "__main__":
    key = jax.random.PRNGKey(0)
    kp, ki, kb1, kb2 = jax.random.split(key, 4)

    params = init_params(kp)
    input_ids = jax.random.randint(ki, (B, S), 0, VOCAB, dtype=jnp.int32)
    # bbox = [x0, y0, x1, y1] with x1 >= x0, y1 >= y0 and all values < MAX_2D
    lo = jax.random.randint(kb1, (B, S, 2), 0, MAX_2D // 2, dtype=jnp.int32)
    ext = jax.random.randint(kb2, (B, S, 2), 0, MAX_2D // 2, dtype=jnp.int32)
    bbox = jnp.concatenate([lo, lo + ext], axis=-1)  # (B, S, 4)

    out = layoutlm_embeddings(input_ids, bbox, params)
    out = jax.block_until_ready(out)

    ref = reference(input_ids, bbox, params)
    assert out.shape == (B, S, HIDDEN)
    assert jnp.allclose(out, ref, atol=1e-5, rtol=1e-5), "mismatch vs reference"

    print("KERNEL_OK")
</pallas_src>

<mosaic_0001>
module attributes {stable_mosaic.version = 11 : i64} {
  func.func @layoutlm_embed_kernel(%arg0: i32, %arg1: memref<8x8xi32, #tpu.memory_space<vmem>>, %arg2: memref<256x128xf32, #tpu.memory_space<vmem>>, %arg3: memref<2x128xf32, #tpu.memory_space<vmem>>, %arg4: memref<8x128xf32, #tpu.memory_space<vmem>>) attributes {dimension_semantics = [#tpu.dimension_semantics<parallel>], iteration_bounds = array<i64: 2>, scalar_prefetch = 0 : i64, scratch_operands = 0 : i64, tpu.core_type = #tpu.core_type<tc>, window_params = [{transform_indices = @transform_0, window_bounds = array<i64: 8, 8>}, {pipeline_mode = #tpu.pipeline_mode<synchronous>, transform_indices = @transform_1, window_bounds = array<i64: 256, 128>}, {pipeline_mode = #tpu.pipeline_mode<synchronous>, transform_indices = @transform_2, window_bounds = array<i64: 2, 128>}, {transform_indices = @transform_3, window_bounds = array<i64: 8, 128>}]} {
    %c0 = arith.constant 0 : index
    %c0_0 = arith.constant 0 : index
    %0 = vector.load %arg1[%c0, %c0_0] : memref<8x8xi32, #tpu.memory_space<vmem>>, vector<8x8xi32>
    %1 = vector.extract_strided_slice %0 {offsets = [0, 0], sizes = [8, 1], strides = [1, 1]} : vector<8x8xi32> to vector<8x1xi32>
    %2 = vector.extract_strided_slice %0 {offsets = [0, 1], sizes = [8, 1], strides = [1, 1]} : vector<8x8xi32> to vector<8x1xi32>
    %3 = vector.extract_strided_slice %0 {offsets = [0, 2], sizes = [8, 1], strides = [1, 1]} : vector<8x8xi32> to vector<8x1xi32>
    %4 = vector.extract_strided_slice %0 {offsets = [0, 3], sizes = [8, 1], strides = [1, 1]} : vector<8x8xi32> to vector<8x1xi32>
    %5 = vector.extract_strided_slice %0 {offsets = [0, 4], sizes = [8, 1], strides = [1, 1]} : vector<8x8xi32> to vector<8x1xi32>
    %6 = vector.extract_strided_slice %0 {offsets = [0, 5], sizes = [8, 1], strides = [1, 1]} : vector<8x8xi32> to vector<8x1xi32>
    %7 = vector.extract_strided_slice %0 {offsets = [0, 6], sizes = [8, 1], strides = [1, 1]} : vector<8x8xi32> to vector<8x1xi32>
    %8 = tpu.iota {dimensions = array<i32: 1>} : vector<8x256xi32>
    %c0_i32 = arith.constant 0 : i32
    %9 = vector.broadcast %c0_i32 : i32 to vector<8x1xi32>
    %10 = arith.addi %1, %9 : vector<8x1xi32>
    %11 = vector.broadcast %10 : vector<8x1xi32> to vector<8x256xi32>
    %12 = arith.cmpi eq, %8, %11 : vector<8x256xi32>
    %13 = arith.extui %12 : vector<8x256xi1> to vector<8x256xi32>
    %c64_i32 = arith.constant 64 : i32
    %14 = vector.broadcast %c64_i32 : i32 to vector<8x1xi32>
    %15 = arith.addi %7, %14 : vector<8x1xi32>
    %16 = vector.broadcast %15 : vector<8x1xi32> to vector<8x256xi32>
    %17 = arith.cmpi eq, %8, %16 : vector<8x256xi32>
    %18 = arith.extui %17 : vector<8x256xi1> to vector<8x256xi32>
    %19 = arith.addi %13, %18 : vector<8x256xi32>
    %c80_i32 = arith.constant 80 : i32
    %20 = vector.broadcast %c80_i32 : i32 to vector<8x1xi32>
    %21 = arith.addi %2, %20 : vector<8x1xi32>
    %22 = vector.broadcast %21 : vector<8x1xi32> to vector<8x256xi32>
    %23 = arith.cmpi eq, %8, %22 : vector<8x256xi32>
    %24 = arith.extui %23 : vector<8x256xi1> to vector<8x256xi32>
    %25 = arith.addi %19, %24 : vector<8x256xi32>
    %c82_i32 = arith.constant 82 : i32
    %26 = vector.broadcast %c82_i32 : i32 to vector<8x1xi32>
    %27 = arith.addi %3, %26 : vector<8x1xi32>
    %28 = vector.broadcast %27 : vector<8x1xi32> to vector<8x256xi32>
    %29 = arith.cmpi eq, %8, %28 : vector<8x256xi32>
    %30 = arith.extui %29 : vector<8x256xi1> to vector<8x256xi32>
    %31 = arith.addi %25, %30 : vector<8x256xi32>
    %c82_i32_1 = arith.constant 82 : i32
    %32 = vector.broadcast %c82_i32_1 : i32 to vector<8x1xi32>
    %33 = arith.addi %5, %32 : vector<8x1xi32>
    %34 = vector.broadcast %33 : vector<8x1xi32> to vector<8x256xi32>
    %35 = arith.cmpi eq, %8, %34 : vector<8x256xi32>
    %36 = arith.extui %35 : vector<8x256xi1> to vector<8x256xi32>
    %37 = arith.addi %31, %36 : vector<8x256xi32>
    %c114_i32 = arith.constant 114 : i32
    %38 = vector.broadcast %c114_i32 : i32 to vector<8x1xi32>
    %39 = arith.addi %4, %38 : vector<8x1xi32>
    %40 = vector.broadcast %39 : vector<8x1xi32> to vector<8x256xi32>
    %41 = arith.cmpi eq, %8, %40 : vector<8x256xi32>
    %42 = arith.extui %41 : vector<8x256xi1> to vector<8x256xi32>
    %43 = arith.addi %37, %42 : vector<8x256xi32>
    %c114_i32_2 = arith.constant 114 : i32
    %44 = vector.broadcast %c114_i32_2 : i32 to vector<8x1xi32>
    %45 = arith.addi %6, %44 : vector<8x1xi32>
    %46 = vector.broadcast %45 : vector<8x1xi32> to vector<8x256xi32>
    %47 = arith.cmpi eq, %8, %46 : vector<8x256xi32>
    %48 = arith.extui %47 : vector<8x256xi1> to vector<8x256xi32>
    %49 = arith.addi %43, %48 : vector<8x256xi32>
    %50 = arith.subi %6, %4 : vector<8x1xi32>
    %c146_i32 = arith.constant 146 : i32
    %51 = vector.broadcast %c146_i32 : i32 to vector<8x1xi32>
    %52 = arith.addi %50, %51 : vector<8x1xi32>
    %53 = vector.broadcast %52 : vector<8x1xi32> to vector<8x256xi32>
    %54 = arith.cmpi eq, %8, %53 : vector<8x256xi32>
    %55 = arith.extui %54 : vector<8x256xi1> to vector<8x256xi32>
    %56 = arith.addi %49, %55 : vector<8x256xi32>
    %57 = arith.subi %5, %3 : vector<8x1xi32>
    %c178_i32 = arith.constant 178 : i32
    %58 = vector.broadcast %c178_i32 : i32 to vector<8x1xi32>
    %59 = arith.addi %57, %58 : vector<8x1xi32>
    %60 = vector.broadcast %59 : vector<8x1xi32> to vector<8x256xi32>
    %61 = arith.cmpi eq, %8, %60 : vector<8x256xi32>
    %62 = arith.extui %61 : vector<8x256xi1> to vector<8x256xi32>
    %63 = arith.addi %56, %62 : vector<8x256xi32>
    %64 = arith.sitofp %63 : vector<8x256xi32> to vector<8x256xf32>
    %c0_3 = arith.constant 0 : index
    %c0_4 = arith.constant 0 : index
    %65 = vector.load %arg2[%c0_3, %c0_4] : memref<256x128xf32, #tpu.memory_space<vmem>>, vector<256x128xf32>
    %cst = arith.constant dense<0.000000e+00> : vector<8x128xf32>
    %66 = tpu.matmul %64, %65, %cst {dimension_numbers = #tpu.dot_dimension_numbers<[1], [0], [0], [1], [0, 0, 1, 1], [], []>} : vector<8x256xf32>, vector<256x128xf32>, vector<8x128xf32> -> vector<8x128xf32>
    %cst_5 = arith.constant dense<0.000000e+00> : vector<8xf32>
    %67 = vector.multi_reduction <add>, %66, %cst_5 [1] : vector<8x128xf32> to vector<8xf32>
    %68 = vector.shape_cast %67 : vector<8xf32> to vector<8x1xf32>
    %cst_6 = arith.constant 3.125000e-02 : f32
    %69 = vector.broadcast %cst_6 : f32 to vector<8x1xf32>
    %70 = arith.mulf %68, %69 : vector<8x1xf32>
    %71 = arith.mulf %66, %66 : vector<8x128xf32>
    %cst_7 = arith.constant dense<0.000000e+00> : vector<8xf32>
    %72 = vector.multi_reduction <add>, %71, %cst_7 [1] : vector<8x128xf32> to vector<8xf32>
    %73 = vector.shape_cast %72 : vector<8xf32> to vector<8x1xf32>
    %cst_8 = arith.constant 3.125000e-02 : f32
    %74 = vector.broadcast %cst_8 : f32 to vector<8x1xf32>
    %75 = arith.mulf %73, %74 : vector<8x1xf32>
    %76 = arith.mulf %70, %70 : vector<8x1xf32>
    %77 = arith.subf %75, %76 : vector<8x1xf32>
    %78 = vector.broadcast %70 : vector<8x1xf32> to vector<8x128xf32>
    %79 = arith.subf %66, %78 : vector<8x128xf32>
    %cst_9 = arith.constant 9.99999997E-7 : f32
    %80 = vector.broadcast %cst_9 : f32 to vector<8x1xf32>
    %81 = arith.addf %77, %80 : vector<8x1xf32>
    %82 = math.rsqrt %81 : vector<8x1xf32>
    %83 = vector.broadcast %82 : vector<8x1xf32> to vector<8x128xf32>
    %84 = arith.mulf %79, %83 : vector<8x128xf32>
    %c0_10 = arith.constant 0 : index
    %c0_11 = arith.constant 0 : index
    %85 = vector.load %arg3[%c0_10, %c0_11] : memref<2x128xf32, #tpu.memory_space<vmem>>, vector<1x128xf32>
    %c1 = arith.constant 1 : index
    %c0_12 = arith.constant 0 : index
    %86 = vector.load %arg3[%c1, %c0_12] : memref<2x128xf32, #tpu.memory_space<vmem>>, vector<1x128xf32>
    %87 = vector.broadcast %85 : vector<1x128xf32> to vector<8x128xf32>
    %88 = arith.mulf %84, %87 : vector<8x128xf32>
    %89 = vector.broadcast %86 : vector<1x128xf32> to vector<8x128xf32>
    %90 = arith.addf %88, %89 : vector<8x128xf32>
    %c0_13 = arith.constant 0 : index
    %c0_14 = arith.constant 0 : index
    %91 = vector.load %arg4[%c0_13, %c0_14] : memref<8x128xf32, #tpu.memory_space<vmem>>, vector<8x128xf32>
    tpu.vector_store %arg4[%c0_13, %c0_14], %90 {strides = array<i32>} : memref<8x128xf32, #tpu.memory_space<vmem>>, vector<8x128xf32>,
    return
  }
  func.func @transform_0(%arg0: i32) -> (i32, i32) {
    %c0_i32 = arith.constant 0 : i32
    %c0_i32_0 = arith.constant 0 : i32
    return %arg0, %c0_i32 : i32, i32
  }
  func.func @transform_1(%arg0: i32) -> (i32, i32) {
    %c0_i32 = arith.constant 0 : i32
    %c0_i32_0 = arith.constant 0 : i32
    %c0_i32_1 = arith.constant 0 : i32
    return %c0_i32, %c0_i32_0 : i32, i32
  }
  func.func @transform_2(%arg0: i32) -> (i32, i32) {
    %c0_i32 = arith.constant 0 : i32
    %c0_i32_0 = arith.constant 0 : i32
    %c0_i32_1 = arith.constant 0 : i32
    return %c0_i32, %c0_i32_0 : i32, i32
  }
  func.func @transform_3(%arg0: i32) -> (i32, i32) {
    %c0_i32 = arith.constant 0 : i32
    %c0_i32_0 = arith.constant 0 : i32
    return %arg0, %c0_i32 : i32, i32
  }
}

</mosaic_0001>

<bundles_post_ra>
// kernel: tpu_custom_call.1
= control target key start
LH: loop header
LB: loop body
LE: loop exit
PB: predicated region body
PF: predicated region fallthrough
CT: control target
= control target key end

     0   :  { %8 = vsyncpa [#allocation3], 0  ;;  %s875_s0 = inlined_call_operand.vmem [shape: s32[16,8], index: 0, kind: input, shape index: {}]   ;;  %s876_s1 = inlined_call_operand.hbm [shape: f32[256,128], index: 1, kind: input, shape index: {}]   ;;  %s877_s2 = inlined_call_operand.vmem [shape: f32[2,128], index: 2, kind: input, shape index: {}]   ;;  %s878_s3 = inlined_call_operand.hbm [shape: f32[16,128], index: 3, kind: output, shape index: {}]  }
   0x1   :  { %9 = vsyncpa [#allocation4], 0 }
   0x2   :  { %11 = vsyncpa [#allocation4 + $0x1], 0  ;;  %s733_s12 = smov 0   ;;  %s735_s13 = smov 0  }
   0x3   :  { %s737_s14 = smov 0   ;;  %s739_s15 = smov 0  }
   0x4 LB: > { %s754_s16 = sadd.s32 4294967295, %s699_s15   ;;  %s488_s17 = sadd.s32 4294967294, %s699_s15   ;;  %s699_s15 = sphi %s739_s15, %s886_s15   ;;  %s695_s14 = sphi %s737_s14, %s885_s14   ;;  %s691_s13 = sphi %s735_s13, %s884_s13   ;;  %s687_s12 = sphi %s733_s12, %s883_s12  }
   0x5   : > { %s758_s18 = sadd.s32 1, %s699_s15   ;;  %s92_s19 = sadd.s32 1, %s695_s14 }
   0x6   : > { %s89_s20 = ssub.s32 %s699_s15, %s758_s18  ;;  %p102_p0 = scmp.ne.s32.totalorder %s695_s14, %s691_s13 }
   0x7   : > { %p90_p1 = scmp.eq.s32.totalorder %s89_s20, 0  ;;  %p103_p2 = scmp.eq.s32.totalorder %s754_s16, 1 }
   0x8   : > { %p108_p3 = scmp.ne.s32.totalorder %s691_s13, %s687_s12  ;;  %p109_p4 = scmp.eq.s32.totalorder %s488_s17, 1 }
   0x9   : > { %s769_s21 = scalar_select %p90_p1, %s695_s14, %s92_s19  }
   0xa   : > { %p771_p5 = por %p103_p2, %p102_p0  ;;  %p775_p6 = por %p109_p4, %p108_p3 }
   0xb   : > { %p489_p7 = scmp.ge.s32.totalorder %s699_s15, 1  ;;  %p116_p8 = scmp.lt.s32.totalorder %s699_s15, 3 }
   0xc   : > { %s880_s23 = scalar_select %p775_p6, 1, 0 }
   0xd   : > { %p551_p9 = scmp.eq.s32.totalorder %s754_s16, 0  ;;  %p782_p10 = pnand %p489_p7, %p116_p8 }
   0xe   : > { %s701_s25 = smov [#allocation2]  }
   0xf   : > { %s128_s26 = sshll.u32 %s701_s25, 4  ;;  %p543_p11 = pneg %p782_p10  ;;  %s129_s26 = int_to_ptr.vmem [resolvable:$true] %s128_s26 }
  0x10   : > { %s620_s27 = scalar_lea.vmem %s129_s26, 4096  ;;  %p628_p3 = scmp.lt.s32.totalorder %s129_s26, %s129_s26 }
  0x11   : > { %p544_p12 = pnand %p551_p9, %p543_p11  ;;  %p621_p0 = scmp.ne.s32.totalorder %s129_s26, %s620_s27 }
  0x12   : > { %p629_p4 = scmp.lt.s32.totalorder %s620_s27, %s620_s27 }
  0x13   : > { %p611_p13 = pneg %p544_p12 }
  0x14   : > { %p630_p6 = por %p629_p4, %p628_p3 }
  0x15   : > { %p623_p1 = pnand %p621_p0, %p611_p13 }
  0x17   : > { %p624_p2 = pneg %p623_p1 }
  0x19   : > { %p631_p7 = pnand %p630_p6, %p624_p2 }
  0x1b   : > { %634 = shalt.err (!%p631_p7)
}
  0x1c   : > { %s702_s28 = smov 128   ;;  %s703_s29 = smov 8  }
  0x1d   : > { %546 = dma.hbm_to_vmem [thread:$0]  (!%p544_p12), %s876_s1, 4096, %s129_s26, [#allocation3], %s702_s28, %s702_s28, %s703_s29  }
  0x1e   : > { %154 = sbr.rel (%p782_p10) target bundleno = 671 (0x29f), region = 32 }
  0x23   : > { %678 = dma.done.wait (%p551_p9), [#allocation3], 4096  }
  0x24   : > { %680 = vsyncadd (%p551_p9), [#allocation3], 4294963200  ;;  %p177_p8 = scmp.lt.s32.totalorder %s754_s16, 1  ;;  %v704_v0 = vmov 6   ;;  %v705_v1 = vmov 0   ;;  %s706_s10 = smov 2   ;;  %v182_v48 = vlaneseq }
  0x25   : > { %598 = vset.pattern.permute.xlu1 %v704_v0  ;;  %597 = vset.pattern.permute.xlu0 %v705_v1  ;;  %v306_v5 = vld [vmem:[#allocation2 + $0xf8] sm:$0xff]  ;;  %v707_v7 = vmov 1   ;;  %v708_v9 = vmov 4   ;;  %v305_v10 = vld [vmem:[#allocation2 + $0xf0] sm:$0xff]  ;;  %v304_v12 = vld [vmem:[#allocation2 + $0xe8] sm:$0xff]  ;;  %v709_v13 = vmov 2  }
  0x26   : > { %s178_s5 = scalar_select %p177_p8, %s754_s16, 1  ;;  %v290_v6 = vld [vmem:[#allocation2 + $0x78] sm:$0xff]  ;;  %502 = vmatprep.subr.mxu0 %v306_v5  ;;  %v289_v11 = vld [vmem:[#allocation2 + $0x70] sm:$0xff]  ;;  %v288_v14 = vld [vmem:[#allocation2 + $0x68] sm:$0xff]  ;;  %v710_v16 = vmov 5   ;;  %v711_v20 = vmov 3  }
  0x27   : > { %503 = vmatpush3.msra.mxu0 %v290_v6  ;;  %v303_v17 = vld [vmem:[#allocation2 + $0xe0] sm:$0xff]  ;;  %v302_v19 = vld [vmem:[#allocation2 + $0xd8] sm:$0xff]  ;;  %v301_v22 = vld [vmem:[#allocation2 + $0xd0] sm:$0xff]  ;;  %v183_v49 = vand.u32 127, %v182_v48  ;;  %s174_s11 = sand.u32 1, %s691_s13   ;;  %s499_s26 = sshll.u32 %s754_s16, 7 }
  0x28   : > { %s495_s6 = sshll.u32 %s178_s5, 3  ;;  %504 = vmatprep.subr.mxu0 %v305_v10  ;;  %v287_v18 = vld [vmem:[#allocation2 + $0x60] sm:$0xff]  ;;  %v286_v21 = vld [vmem:[#allocation2 + $0x58] sm:$0xff]  ;;  %v285_v23 = vld [vmem:[#allocation2 + $0x50] sm:$0xff]  ;;  %s494_s17 = sshll.u32 %s174_s11, 3 }
  0x29   : > { %s180_s9 = scalar_lea.vmem %s875_s0, %s495_s6  ;;  %505 = vmatpush3.msra.mxu0 %v289_v11  ;;  %v300_v24 = vld [vmem:[#allocation2 + $0xc8] sm:$0xff]  ;;  %v299_v26 = vld [vmem:[#allocation2 + $0xc0] sm:$0xff]  ;;  %v298_v28 = vld [vmem:[#allocation2 + $0xb8] sm:$0xff]  ;;  %v184_v51 = vadd.s32 128, %v183_v49  ;;  %s176_s27 = scalar_lea.vmem [#allocation5], %s494_s17 }
  0x2a   : > { %v805_v2 = vld [vmem:[%s180_s9] sm:$0xff]  ;;  %506 = vmatprep.subr.mxu0 %v304_v12  ;;  %v284_v25 = vld [vmem:[#allocation2 + $0x48] sm:$0xff]  ;;  %v282_v29 = vld [vmem:[#allocation2 + $0x38] sm:$0xff]  ;;  %s417_s28 = sshll.u32 %s176_s27, 4  ;;  %s415_s4 = scalar_lea.hbm %s878_s3, %s499_s26  ;;  %s418_s28 = int_to_ptr.vmem [resolvable:$true] %s417_s28 }
  0x2b   : > { %250 = vrot.lane.b32.xlu0 %v805_v2, %s706_s10  ;;  %v192_v3 = vadd.s32 64, %v805_v2  ;;  %v202_v4 = vadd.s32 80, %v805_v2  ;;  %v212_v8 = vadd.s32 82, %v805_v2  ;;  %v231_v15 = vadd.s32 114, %v805_v2  ;;  %507 = vmatpush3.msra.mxu0 %v288_v14  ;;  %v283_v27 = vld [vmem:[#allocation2 + $0x40] sm:$0xff]  ;;  %v297_v30 = vld [vmem:[#allocation2 + $0xb0] sm:$0xff] }
  0x2c   : > { %508 = vmatprep.subr.mxu0 %v303_v17  ;;  %v281_v31 = vld [vmem:[#allocation2 + $0x30] sm:$0xff]  ;;  %v296_v32 = vld [vmem:[#allocation2 + $0xa8] sm:$0xff]  ;;  %v295_v34 = vld [vmem:[#allocation2 + $0xa0] sm:$0xff]  ;;  %s404_s5 = scalar_lea.sflag [#allocation4], %s174_s11  ;;  %s635_s6 = scalar_lea.vmem %s418_s28, 128 }
  0x2d   : > { %194 = vperm.xlu1 %598, %v192_v3   ;;  %509 = vmatpush3.msra.mxu0 %v287_v18  ;;  %v280_v33 = vld [vmem:[#allocation2 + $0x28] sm:$0xff]  ;;  %v279_v36 = vld [vmem:[#allocation2 + $0x20] sm:$0xff]  ;;  %v294_v38 = vld [vmem:[#allocation2 + $0x98] sm:$0xff]  ;;  %p636_p6 = scmp.ne.s32.totalorder %s418_s28, %s635_s6  ;;  %s712_s7 = smov [#allocation5]  }
  0x2e   : > { %510 = vmatprep.subr.mxu0 %v302_v19  ;;  %v278_v39 = vld [vmem:[#allocation2 + $0x18] sm:$0xff]  ;;  %v293_v42 = vld [vmem:[#allocation2 + $0x90] sm:$0xff]  ;;  %v292_v44 = vld [vmem:[#allocation2 + $0x88] sm:$0xff]  ;;  %s639_s8 = sshll.u32 %s712_s7, 4  ;;  %s640_s8 = int_to_ptr.vmem [resolvable:$false] %s639_s8 }
  0x2f   : > { %186 = vperm.xlu0 %597, %v805_v2   ;;  %511 = vmatpush3.msra.mxu0 %v286_v21  ;;  %v277_v43 = vld [vmem:[#allocation2 + $0x10] sm:$0xff]  ;;  %v276_v45 = vld [vmem:[#allocation2 + $0x8] sm:$0xff]  ;;  %v291_v46 = vld [vmem:[#allocation2 + $0x80] sm:$0xff]  ;;  %p637_p9 = pnand %p636_p6, %p771_p5  ;;  %s641_s16 = scalar_lea.vmem %s640_s8, 256 }
  0x30   : > { %512 = vmatprep.subr.mxu0 %v301_v22  ;;  %v275_v47 = vld [vmem:[#allocation2] sm:$0xff]  ;;  %p642_p11 = scmp.lt.s32.totalorder %s418_s28, %s640_s8  ;;  %p643_p12 = scmp.lt.s32.totalorder %s641_s16, %s635_s6 }
  0x31   : > { %599 = vset.pattern.permute.xlu1 %v707_v7  ;;  %513 = vmatpush3.msra.mxu0 %v285_v23  ;;  %p638_p10 = pneg %p637_p9 }
  0x32   : > { %204 = vperm.xlu1 %599, %v202_v4   ;;  %514 = vmatprep.subr.mxu0 %v300_v24  ;;  %p644_p13 = por %p643_p12, %p642_p11 }
  0x33   : > { %601 = vset.pattern.permute.xlu0 %v708_v9  ;;  %515 = vmatpush3.msra.mxu0 %v284_v25 }
  0x34   : > { %223 = vperm.xlu0 %601, %v212_v8   ;;  %516 = vmatprep.subr.mxu0 %v299_v26  ;;  %p645_p0 = pnand %p644_p13, %p638_p10 }
  0x35   : > { %517 = vmatpush3.msra.mxu0 %v283_v27 }
  0x36   : > { %600 = vset.pattern.permute.xlu1 %v709_v13  ;;  %518 = vmatprep.subr.mxu0 %v298_v28 }
  0x37   : > { %214 = vperm.xlu1 %600, %v212_v8   ;;  %519 = vmatpush3.msra.mxu0 %v282_v29 }
  0x38   : > { %604 = vset.pattern.permute.xlu0 %v710_v16  ;;  %520 = vmatprep.subr.mxu0 %v297_v30 }
  0x39   : > { %521 = vmatpush3.msra.mxu0 %v281_v31 }
  0x3a   : > { %522 = vmatprep.subr.mxu0 %v296_v32 }
  0x3b   : > { %602 = vset.pattern.permute.xlu1 %v711_v20  ;;  %523 = vmatpush3.msra.mxu0 %v280_v33 }
  0x3c   : > { %233 = vperm.xlu1 %602, %v231_v15   ;;  %524 = vmatprep.subr.mxu0 %v295_v34 }
  0x3d   : > { %525 = vmatpush3.msra.mxu0 %v279_v36 }
  0x3e   : > { %526 = vmatprep.subr.mxu0 %v294_v38 }
  0x3f   : > { %527 = vmatpush3.msra.mxu0 %v278_v39 }
  0x40   : > { %603 = vset.pattern.permute.xlu1 %v710_v16  ;;  %528 = vmatprep.subr.mxu0 %v293_v42 }
  0x41   : > { %242 = vperm.xlu1 %603, %v231_v15   ;;  %529 = vmatpush3.msra.mxu0 %v277_v43 }
  0x42   : > { %530 = vmatprep.subr.mxu0 %v292_v44 }
  0x43   : > { %531 = vmatpush3.msra.mxu0 %v276_v45  ;;  %v496_v45 = vld [vmem:[%s877_s2] ss:$0 sm:$0xff] }
  0x44   : > { %532 = vmatprep.subr.mxu0 %v291_v46 }
  0x45   : > { %605 = vset.pattern.permute.xlu1 %v708_v9  ;;  %533 = vmatpush3.msra.mxu0 %v275_v47  ;;  %v497_v47 = vld [vmem:[%s877_s2 + $0x1] ss:$0 sm:$0xff] }
  0x9d   : > { %v251_v35 = vpop.permute.xlu0 %250 }
  0x9e   : > { %v252_v37 = vsub.s32 %v805_v2, %v251_v35 }
  0xa0   : > { %v253_v40 = vadd.s32 146, %v252_v37  ;;  %v263_v41 = vadd.s32 178, %v252_v37 }
  0xa2   : > { %255 = vperm.xlu0 %604, %v253_v40   ;;  %265 = vperm.xlu1 %605, %v263_v41  }
  0xa6   : > { %606 = vset.pattern.permute.xlu0 %v708_v9 }
  0xa8   : > { %v195_v50 = vpop.permute.xlu1 %194 }
  0xa9   : > { %vm196_vm0 = vcmp.eq.s32.totalorder %v183_v49, %v195_v50  ;;  %vm197_vm1 = vcmp.eq.s32.totalorder %v184_v51, %v195_v50 }
  0xaa   : > { %v187_v52 = vpop.permute.xlu0 %186  ;;  %v198_v54 = vsel %vm196_vm0, 1, %v705_v1  ;;  %v199_v55 = vsel %vm197_vm1, 1, %v705_v1 }
  0xab   : > { %vm188_vm2 = vcmp.eq.s32.totalorder %v183_v49, %v187_v52  ;;  %vm189_vm3 = vcmp.eq.s32.totalorder %v184_v51, %v187_v52 }
  0xac   : > { %v190_v56 = vsel %vm188_vm2, 1, %v705_v1  ;;  %v191_v57 = vsel %vm189_vm3, 1, %v705_v1 }
  0xad   : > { %v205_v53 = vpop.permute.xlu1 %204  ;;  %v200_v59 = vadd.s32 %v198_v54, %v190_v56  ;;  %v201_v60 = vadd.s32 %v199_v55, %v191_v57 }
  0xae   : > { %vm206_vm4 = vcmp.eq.s32.totalorder %v183_v49, %v205_v53  ;;  %vm207_vm5 = vcmp.eq.s32.totalorder %v184_v51, %v205_v53 }
  0xaf   : > { %v208_v61 = vsel %vm206_vm4, 1, %v705_v1  ;;  %v209_v62 = vsel %vm207_vm5, 1, %v705_v1  ;;  %v224_v63 = vpop.permute.xlu0 %223 }
  0xb0   : > { %v210_v0 = vadd.s32 %v208_v61, %v200_v59  ;;  %v211_v2 = vadd.s32 %v209_v62, %v201_v60  ;;  %vm225_vm8 = vcmp.eq.s32.totalorder %v183_v49, %v224_v63  ;;  %vm226_vm9 = vcmp.eq.s32.totalorder %v184_v51, %v224_v63 }
  0xb1   : > { %v227_v8 = vsel %vm225_vm8, 1, %v705_v1  ;;  %v228_v9 = vsel %vm226_vm9, 1, %v705_v1 }
  0xb2   : > { %v215_v58 = vpop.permute.xlu1 %214 }
  0xb3   : > { %vm216_vm6 = vcmp.eq.s32.totalorder %v183_v49, %v215_v58  ;;  %vm217_vm7 = vcmp.eq.s32.totalorder %v184_v51, %v215_v58 }
  0xb4   : > { %v218_v3 = vsel %vm216_vm6, 1, %v705_v1  ;;  %v219_v4 = vsel %vm217_vm7, 1, %v705_v1 }
  0xb5   : > { %v220_v6 = vadd.s32 %v218_v3, %v210_v0  ;;  %v221_v7 = vadd.s32 %v219_v4, %v211_v2 }
  0xb7   : > { %v234_v5 = vpop.permute.xlu1 %233  ;;  %v229_v11 = vadd.s32 %v227_v8, %v220_v6  ;;  %v230_v12 = vadd.s32 %v228_v9, %v221_v7 }
  0xb8   : > { %vm235_vm10 = vcmp.eq.s32.totalorder %v183_v49, %v234_v5  ;;  %vm236_vm11 = vcmp.eq.s32.totalorder %v184_v51, %v234_v5 }
  0xb9   : > { %v237_v13 = vsel %vm235_vm10, 1, %v705_v1  ;;  %v238_v14 = vsel %vm236_vm11, 1, %v705_v1 }
  0xba   : > { %v239_v15 = vadd.s32 %v237_v13, %v229_v11  ;;  %v240_v16 = vadd.s32 %v238_v14, %v230_v12 }
  0xbc   : > { %v243_v10 = vpop.permute.xlu1 %242 }
  0xbd   : > { %vm244_vm12 = vcmp.eq.s32.totalorder %v183_v49, %v243_v10  ;;  %vm245_vm13 = vcmp.eq.s32.totalorder %v184_v51, %v243_v10 }
  0xbe   : > { %v246_v17 = vsel %vm244_vm12, 1, %v705_v1  ;;  %v247_v18 = vsel %vm245_vm13, 1, %v705_v1 }
  0xbf   : > { %v248_v19 = vadd.s32 %v246_v17, %v239_v15  ;;  %v249_v20 = vadd.s32 %v247_v18, %v240_v16 }
 0x11d   : > { %v256_v21 = vpop.permute.xlu0 %255  ;;  %v266_v22 = vpop.permute.xlu1 %265 }
 0x11e   : > { %vm257_vm14 = vcmp.eq.s32.totalorder %v183_v49, %v256_v21  ;;  %vm258_vm15 = vcmp.eq.s32.totalorder %v184_v51, %v256_v21  ;;  %vm267_vm0 = vcmp.eq.s32.totalorder %v183_v49, %v266_v22  ;;  %vm268_vm1 = vcmp.eq.s32.totalorder %v184_v51, %v266_v22 }
 0x11f   : > { %v259_v23 = vsel %vm257_vm14, 1, %v705_v1  ;;  %v260_v24 = vsel %vm258_vm15, 1, %v705_v1  ;;  %v269_v27 = vsel %vm267_vm0, 1, %v705_v1  ;;  %v270_v28 = vsel %vm268_vm1, 1, %v705_v1 }
 0x120   : > { %v261_v25 = vadd.s32 %v259_v23, %v248_v19  ;;  %v262_v26 = vadd.s32 %v260_v24, %v249_v20 }
 0x122   : > { %v271_v29 = vadd.s32 %v269_v27, %v261_v25  ;;  %v272_v30 = vadd.s32 %v270_v28, %v262_v26 }
 0x124   : > { %v274_v31 = vcvt.s32.f32 %v272_v30  ;;  %v273_v32 = vcvt.s32.f32 %v271_v29 }
 0x126   : > { %371 = vmatprep.mubr.f32.mxu0 %v274_v31 }
 0x127   : > { %372 = vmatmul.mubr.f32.vlgmr.msra.gmra.mxu0 %v273_v32 }
 0x1e7   : > { %v534_v33 = vpop.f32.mrf.mxu0 }
 0x1e9   : > { %v535_v34 = vpop.f32.mrf.mxu0 }
 0x1ea   : > { %v536_v35 = vadd.f32 %v535_v34, %v534_v33 }
 0x1ec   : > { %377 = vadd.xlane.f32.xlu1 %v536_v35  ;;  %v380_v36 = vmul.f32 %v536_v35, %v536_v35 }
 0x1ee   : > { %381 = vadd.xlane.f32.xlu0 %v380_v36 }
 0x275   : > { %v378_v37 = vpop.xlane.xlu1 %377 }
 0x276   : > { %v379_v38 = vmul.f32 0.03125, %v378_v37 }
 0x277   : > { %v382_v39 = vpop.xlane.xlu0 %381 }
 0x278   : > { %v384_v40 = vmul.f32 %v379_v38, %v379_v38  ;;  %v383_v41 = vmul.f32 0.03125, %v382_v39  ;;  %v386_v43 = vsub.f32 %v536_v35, %v379_v38 }
 0x27a   : > { %v385_v1 = vsub.f32 %v383_v41, %v384_v40 }
 0x27c   : > { %v387_v42 = vadd.f32 1e-06, %v385_v1 }
 0x27e   : > { %607 = vrsqrt.f32 %v387_v42 }
 0x28b   : > { %v608_v44 = vpop.eup %607 }
 0x28c   : > { %v389_v46 = vmul.f32 %v608_v44, %v386_v43 }
 0x28e   : > { %v396_v48 = vmul.f32 %v496_v45, %v389_v46 }
 0x290   : > { %v401_v49 = vadd.f32 %v497_v47, %v396_v48 }
 0x292   : > { %402 = vst [vmem:[%s176_s27] sm:$0xff] %v401_v49 }
 0x293   : > { %648 = shalt.err (!%p645_p0)
}
 0x294   : > { %s649_s9 = scalar_lea.hbm %s415_s4, 128  ;;  %s653_s17 = scalar_lea.hbm %s878_s3, 256 }
 0x295   : > { %p650_p1 = scmp.ne.s32.totalorder %s415_s4, %s649_s9  ;;  %p654_p4 = scmp.lt.s32.totalorder %s415_s4, %s878_s3 }
 0x296   : > { %p655_p7 = scmp.lt.s32.totalorder %s653_s17, %s649_s9 }
 0x297   : > { %p651_p2 = pnand %p650_p1, %p771_p5 }
 0x298   : > { %p656_p8 = por %p655_p7, %p654_p4 }
 0x299   : > { %p652_p3 = pneg %p651_p2 }
 0x29b   : > { %p657_p6 = pnand %p656_p8, %p652_p3 }
 0x29d   : > { %660 = shalt.err (!%p657_p6)
}
 0x29e   : > { %541 = dma.vmem_to_hbm [thread:$0]  (%p771_p5), %s418_s28, 128, %s415_s4, %s404_s5  }
 0x29f PF: > { %p553_p9 = scmp.ge.s32.totalorder %s699_s15, 2  ;;  %s429_s24 = sand.u32 1, %s687_s12  }
 0x2a0   : > { %p882_p10 = scmp.ne.s32.totalorder %s880_s23, 0  ;;  %s430_s25 = scalar_lea.sflag [#allocation4], %s429_s24 }
 0x2a2   : > { %p548_p11 = pnand %p553_p9, %p882_p10 }
 0x2a4   : > { %p549_p12 = pneg %p548_p11 }
 0x2a6   : > { %682 = dma.done.wait (%p549_p12), %s430_s25, 128  }
 0x2a7   : > { %684 = vsyncadd (%p549_p12), %s430_s25, 4294967168  ;;  %p14_p13 = scmp.ge.s32.totalorder %s758_s18, 4   ;;  %s883_s12 = smov %s691_s13 }
 0x2a8   : > { %s884_s13 = smov %s695_s14  ;;  %s885_s14 = smov %s769_s21 }
 0x2a9   : > { %s886_s15 = smov %s758_s18  ;;  %16 = sbr.rel (!%p14_p13) target bundleno = 4 (0x4), region = 72 }
 0x2ae   :  { %435 = vsyncpa [#allocation3], 1 }
 0x2af   :  { %437 = vsyncpa [#allocation3 + $0x1], 1 }
 0x2b0   :  { %438 = vsyncpa [#allocation4], 1 }
 0x2b1   :  { %440 = vsyncpa [#allocation4 + $0x1], 1 }

</bundles_post_ra>
